<compile_context>
chip_gen: v7x
topology: tpu7x:2x2x1
jax: 0.10.0
libtpu: 0.0.40
codegen_flags: <defaults>
</compile_context>

<pallas_src>
import math

import jax
import jax.numpy as jnp
from jax.experimental import pallas as pl
from jax.experimental.pallas import tpu as pltpu


def _round_up(x, m):
    return -(-x // m) * m


def _pick_lane_width(total, lane_base, max_lanes, sub):
    """Pick the lane width L (multiple of lane_base, <= max_lanes).

    Prefers the largest L that divides `total` exactly while leaving at least
    `sub` rows (full sublane groups); then any exact divisor; only as a last
    resort a width that needs a small (< L element) tail pad.
    """
    k_max = max(1, min(max_lanes, total) // lane_base)
    best_divisor = None
    for k in range(k_max, 0, -1):
        L = lane_base * k
        if total % L == 0:
            if total // L >= sub:
                return L
            if best_divisor is None:
                best_divisor = L
    if best_divisor is not None:
        return best_divisor
    return lane_base * k_max  # fallback: sub-L tail pad only


def taylor_mask_forward(image, pruned, *,
                        target_block_bytes=4 * 1024 * 1024,
                        max_lanes=2048,
                        vmem_limit_bytes=40 * 1024 * 1024):
    """image: (..., C) array; pruned: (C,) bool. Returns image * mask (mask on last axis)."""
    orig_shape = image.shape
    C = orig_shape[-1]
    dtype = image.dtype
    itemsize = jnp.dtype(dtype).itemsize
    total = math.prod(orig_shape)

    # 0/1 mask in the image dtype (built once; no per-tile compare/select in-kernel).
    mask_f = jnp.where(pruned, jnp.zeros((), dtype), jnp.ones((), dtype))  # (C,)

    # Sublane-packing multiple: 8 rows for 4-byte, 16 for bf16, 32 for int8/fp8.
    sub = max(8, 32 // itemsize)

    lane_base = math.lcm(C, 128)
    L = _pick_lane_width(total, lane_base, max_lanes, sub)

    padded_total = _round_up(total, L)
    pad = padded_total - total          # 0 in the common case (exact fold)
    rows = padded_total // L

    # Row tile: ~target_block_bytes, multiple of the sublane group, and capped
    # at ~rows/2 so the grid has >= 2 steps (keeps both v7x TCs busy).
    if rows <= sub:
        block_m = rows                  # tiny input: block equals full dim
    else:
        desired = max(sub, (target_block_bytes // (L * itemsize)) // sub * sub)
        half = _round_up(-(-rows // 2), sub)
        block_m = max(sub, min(desired, half))
    grid_m = pl.cdiv(rows, block_m)     # non-divisible grid; partial block masked
    mrows = min(sub, block_m)

    # Mask pre-broadcast over a whole sublane group (channel -> lane tiling).
    mask_blk = jnp.tile(mask_f, (mrows, L // C))          # (mrows, L)

    flat = image.reshape(-1)
    if pad:
        # Rare fallback: pad only the sub-L tail (a few KB), never the whole array
        # in the common case.  Padded elements are never read back.
        flat = jnp.pad(flat, (0, pad))
    x2d = flat.reshape(rows, L)         # free reshape (contiguous, row-major)

    def kernel(mask_ref, x_ref, o_ref):
        x = x_ref[...]                                    # (block_m, L)
        m = mask_ref[...]                                 # (mrows, L), whole vregs
        if block_m == mrows:
            o_ref[...] = x * m
        else:
            # Layout-preserving regroup of the sublane dim (no tile-boundary
            # crossing): per-vreg reuse of the mask, no sublane broadcast.
            g = block_m // mrows
            o_ref[...] = (x.reshape(g, mrows, L) * m).reshape(block_m, L)

    # NOTE: input_output_aliases={1: 0} is intentionally not set: called eagerly
    # the slab is a non-donated entry parameter, so XLA would insert a defensive
    # copy; aliasing is only a footprint win (not bandwidth) for this op.
    out2d = pl.pallas_call(
        kernel,
        out_shape=jax.ShapeDtypeStruct((rows, L), dtype),
        grid_spec=pltpu.PrefetchScalarGridSpec(
            num_scalar_prefetch=0,
            grid=(grid_m,),
            in_specs=[
                pl.BlockSpec((mrows, L), lambda i: (0, 0)),     # mask, reused
                pl.BlockSpec((block_m, L), lambda i: (i, 0)),   # image rows
            ],
            out_specs=pl.BlockSpec((block_m, L), lambda i: (i, 0)),
        ),
        compiler_params=pltpu.CompilerParams(
            dimension_semantics=("parallel",),      # megacore sharding on v7x
            vmem_limit_bytes=vmem_limit_bytes,
        ),
    )(mask_blk, x2d)

    if pad:
        return out2d.reshape(-1)[:total].reshape(orig_shape)
    return out2d.reshape(orig_shape)    # free reshape (no pad path)


if __name__ == "__main__":
    key = jax.random.PRNGKey(0)

    def reference(img, pr):
        m = jnp.where(pr, jnp.zeros((), img.dtype), jnp.ones((), img.dtype))
        return img * m                   # broadcast over the last (channel) axis

    # Primary example: (B, N1, N2, C), exactly image * mask[None, None, None, :].
    B, N1, N2, C = 2, 4, 16, 16
    image = jax.random.normal(key, (B, N1, N2, C), dtype=jnp.float32)
    pruned = jnp.zeros((C,), dtype=jnp.bool_).at[jnp.array([1, 5])].set(True)
    out = jax.block_until_ready(taylor_mask_forward(image, pruned))
    assert out.shape == image.shape and out.dtype == image.dtype
    assert jnp.allclose(out, reference(image, pruned)), "mismatch (primary)"

    # Partial final grid block (rows % block_m != 0): OOB writes must be masked.
    img2 = jax.random.normal(jax.random.PRNGKey(1), (5, 4, 8, 16), dtype=jnp.float32)
    pr2 = jnp.zeros((16,), dtype=jnp.bool_).at[jnp.array([0, 3, 7])].set(True)
    out2 = jax.block_until_ready(taylor_mask_forward(img2, pr2))
    assert jnp.allclose(out2, reference(img2, pr2)), "mismatch (partial block)"

    # Multi-sublane-group block (block_m > sub): exercises the in-kernel regroup.
    img3 = jax.random.normal(jax.random.PRNGKey(2), (8, 16, 32, 16), dtype=jnp.float32)
    out3 = jax.block_until_ready(taylor_mask_forward(img3, pr2))
    assert jnp.allclose(out3, reference(img3, pr2)), "mismatch (multi-group)"

    # Tail-pad fallback (element count not a multiple of lcm(C, 128)).
    img4 = jax.random.normal(jax.random.PRNGKey(3), (2, 3, 7, 12), dtype=jnp.float32)
    pr4 = jnp.zeros((12,), dtype=jnp.bool_).at[jnp.array([2, 9])].set(True)
    out4 = jax.block_until_ready(taylor_mask_forward(img4, pr4))
    assert jnp.allclose(out4, reference(img4, pr4)), "mismatch (tail pad)"

    print("KERNEL_OK")
</pallas_src>

<mosaic_0001>
module attributes {stable_mosaic.version = 11 : i64} {
  func.func @kernel(%arg0: i32, %arg1: memref<8x256xf32, #tpu.memory_space<vmem>>, %arg2: memref<8x256xf32, #tpu.memory_space<vmem>>, %arg3: memref<8x256xf32, #tpu.memory_space<vmem>>) attributes {dimension_semantics = [#tpu.dimension_semantics<parallel>], iteration_bounds = array<i64: 1>, scalar_prefetch = 0 : i64, scratch_operands = 0 : i64, tpu.core_type = #tpu.core_type<tc>, window_params = [{pipeline_mode = #tpu.pipeline_mode<synchronous>, transform_indices = @transform_0, window_bounds = array<i64: 8, 256>}, {transform_indices = @transform_1, window_bounds = array<i64: 8, 256>}, {transform_indices = @transform_2, window_bounds = array<i64: 8, 256>}]} {
    %c0 = arith.constant 0 : index
    %c0_0 = arith.constant 0 : index
    %0 = vector.load %arg2[%c0, %c0_0] : memref<8x256xf32, #tpu.memory_space<vmem>>, vector<8x256xf32>
    %c0_1 = arith.constant 0 : index
    %c0_2 = arith.constant 0 : index
    %1 = vector.load %arg1[%c0_1, %c0_2] : memref<8x256xf32, #tpu.memory_space<vmem>>, vector<8x256xf32>
    %2 = arith.mulf %0, %1 : vector<8x256xf32>
    %c0_3 = arith.constant 0 : index
    %c0_4 = arith.constant 0 : index
    %3 = vector.load %arg3[%c0_3, %c0_4] : memref<8x256xf32, #tpu.memory_space<vmem>>, vector<8x256xf32>
    tpu.vector_store %arg3[%c0_3, %c0_4], %2 {strides = array<i32>} : memref<8x256xf32, #tpu.memory_space<vmem>>, vector<8x256xf32>,
    return
  }
  func.func @transform_0(%arg0: i32) -> (i32, i32) {
    %c0_i32 = arith.constant 0 : i32
    %c0_i32_0 = arith.constant 0 : i32
    %c0_i32_1 = arith.constant 0 : i32
    return %c0_i32, %c0_i32_0 : i32, i32
  }
  func.func @transform_1(%arg0: i32) -> (i32, i32) {
    %c0_i32 = arith.constant 0 : i32
    %c0_i32_0 = arith.constant 0 : i32
    return %arg0, %c0_i32 : i32, i32
  }
  func.func @transform_2(%arg0: i32) -> (i32, i32) {
    %c0_i32 = arith.constant 0 : i32
    %c0_i32_0 = arith.constant 0 : i32
    return %arg0, %c0_i32 : i32, i32
  }
}

</mosaic_0001>

<bundles_post_ra>
// kernel: tpu_custom_call.1
= control target key start
LH: loop header
LB: loop body
LE: loop exit
PB: predicated region body
PF: predicated region fallthrough
CT: control target
= control target key end

     0   :  { %7 = vsyncpa [#allocation3], 0  ;;  %s189_s0 = inlined_call_operand.hbm [shape: f32[8,256], index: 0, kind: input, shape index: {}]   ;;  %s190_s1 = inlined_call_operand.hbm [shape: f32[8,256], index: 1, kind: input, shape index: {}]   ;;  %s191_s2 = inlined_call_operand.hbm [shape: f32[8,256], index: 2, kind: output, shape index: {}]  }
   0x1   :  { %8 = vsyncpa [#allocation6], 0 }
   0x2   :  { %9 = vsyncpa [#allocation4], 0  ;;  %s135_s9 = smov [#allocation2]   ;;  %s136_s11 = smov [#allocation5]  }
   0x3   :  { %s16_s10 = sshll.u32 %s135_s9, 4  ;;  %s26_s12 = sshll.u32 %s136_s11, 4  ;;  %s17_s10 = int_to_ptr.vmem [resolvable:$true] %s16_s10  ;;  %s27_s12 = int_to_ptr.vmem [resolvable:$true] %s26_s12 }
   0x4   :  { %s63_s15 = scalar_lea.hbm %s189_s0, 256 }
   0x5   :  { %p64_p0 = scmp.ne.s32.totalorder %s189_s0, %s63_s15  ;;  %p67_p1 = scmp.lt.u32.totalorder %s63_s15, %s189_s0 }
   0x7   :  { %p69_p2 = pnand %p67_p1, %p64_p0 }
   0x9   :  { %72 = shalt.err (!%p69_p2)
}
   0xa   :  { %s73_s20 = scalar_lea.vmem %s17_s10, 256  ;;  %p78_p4 = scmp.lt.s32.totalorder %s17_s10, %s17_s10 }
   0xb   :  { %p74_p3 = scmp.ne.s32.totalorder %s17_s10, %s73_s20  ;;  %p79_p5 = scmp.lt.s32.totalorder %s73_s20, %s73_s20 }
   0xd   :  { %p80_p6 = por %p79_p5, %p78_p4 }
   0xf   :  { %p81_p7 = pnand %p80_p6, %p74_p3 }
  0x11   :  { %84 = shalt.err (!%p81_p7)
}
  0x12   :  { %19 = dma.hbm_to_vmem [thread:$0]  %s189_s0, 256, %s17_s10, [#allocation3]  }
  0x13   :  { %s85_s25 = scalar_lea.hbm %s190_s1, 256 }
  0x14   :  { %p86_p8 = scmp.ne.s32.totalorder %s190_s1, %s85_s25  ;;  %p89_p9 = scmp.lt.u32.totalorder %s85_s25, %s190_s1 }
  0x16   :  { %p91_p10 = pnand %p89_p9, %p86_p8 }
  0x18   :  { %94 = shalt.err (!%p91_p10)
}
  0x19   :  { %s95_s30 = scalar_lea.vmem %s27_s12, 256  ;;  %p100_p12 = scmp.lt.s32.totalorder %s27_s12, %s27_s12 }
  0x1a   :  { %p96_p11 = scmp.ne.s32.totalorder %s27_s12, %s95_s30  ;;  %p101_p13 = scmp.lt.s32.totalorder %s95_s30, %s95_s30 }
  0x1c   :  { %p102_p0 = por %p101_p13, %p100_p12 }
  0x1e   :  { %p103_p1 = pnand %p102_p0, %p96_p11 }
  0x20   :  { %106 = shalt.err (!%p103_p1)
}
  0x21   :  { %29 = dma.hbm_to_vmem [thread:$0]  %s190_s1, 256, %s27_s12, [#allocation6]  }
  0x22   :  { %129 = dma.done.wait [#allocation3], 256  }
  0x23   :  { %130 = vsyncadd [#allocation3], 4294967040 }
  0x24   :  { %131 = dma.done.wait [#allocation6], 256  }
  0x25   :  { %132 = vsyncadd [#allocation6], 4294967040  ;;  %s137_s4 = smov [#allocation7]   ;;  %v36_v0 = vld [vmem:[#allocation5] sm:$0xff]  ;;  %v38_v1 = vld [vmem:[#allocation2] sm:$0xff] }
  0x26   :  { %s50_s5 = sshll.u32 %s137_s4, 4  ;;  %v37_v2 = vld [vmem:[#allocation5 + $0x8] sm:$0xff]  ;;  %v40_v3 = vmul.f32 %v38_v1, %v36_v0  ;;  %v39_v4 = vld [vmem:[#allocation2 + $0x8] sm:$0xff]  ;;  %s51_s5 = int_to_ptr.vmem [resolvable:$true] %s50_s5 }
  0x27   :  { %v41_v5 = vmul.f32 %v39_v4, %v37_v2  ;;  %s107_s6 = scalar_lea.vmem %s51_s5, 256  ;;  %p112_p3 = scmp.lt.s32.totalorder %s51_s5, %s51_s5 }
  0x28   :  { %42 = vst [vmem:[#allocation7] sm:$0xff] %v40_v3  ;;  %p108_p2 = scmp.ne.s32.totalorder %s51_s5, %s107_s6  ;;  %p113_p4 = scmp.lt.s32.totalorder %s107_s6, %s107_s6 }
  0x29   :  { %43 = vst [vmem:[#allocation7 + $0x8] sm:$0xff] %v41_v5 }
  0x2a   :  { %p114_p5 = por %p113_p4, %p112_p3 }
  0x2c   :  { %p115_p6 = pnand %p114_p5, %p108_p2 }
  0x2e   :  { %118 = shalt.err (!%p115_p6)
}
  0x2f   :  { %s119_s8 = scalar_lea.hbm %s191_s2, 256 }
  0x30   :  { %p120_p7 = scmp.ne.s32.totalorder %s191_s2, %s119_s8  ;;  %p123_p8 = scmp.lt.u32.totalorder %s119_s8, %s191_s2 }
  0x32   :  { %p125_p9 = pnand %p123_p8, %p120_p7 }
  0x34   :  { %128 = shalt.err (!%p125_p9)
}
  0x35   :  { %53 = dma.vmem_to_hbm [thread:$0]  %s51_s5, 256, %s191_s2, [#allocation4]  }
  0x36   :  { %133 = dma.done.wait [#allocation4], 256  }
  0x37   :  { %134 = vsyncadd [#allocation4], 4294967040 }
  0x38   :  { %57 = vsyncpa [#allocation3], 1 }
  0x39   :  { %58 = vsyncpa [#allocation6], 1 }
  0x3a   :  { %59 = vsyncpa [#allocation4], 1 }

</bundles_post_ra>
